<compile_context>
chip_gen: v6e
topology: v6e:2x2x1
jax: 0.10.0
libtpu: 0.0.40
codegen_flags: <defaults>
</compile_context>

<pallas_src>
import jax
import jax.numpy as jnp
from jax.experimental import pallas as pl
from jax.experimental.pallas import tpu as pltpu

_LANES = 128  # vreg lane width; last dim of every block is lane-dense


def _sublanes_for(dtype) -> int:
    """Minimum second-minor tile granularity for the dtype's packing."""
    itemsize = jnp.dtype(dtype).itemsize
    return {4: 8, 2: 16, 1: 32}.get(itemsize, 8)


def _tile_bytes_budget() -> int:
    """Per-tile bytes. Pipeline holds in+out x 2 buffers = 4x this in VMEM."""
    try:
        kind = jax.devices()[0].device_kind.lower()
    except Exception:
        kind = ""
    if "v6" in kind or "v7" in kind:
        return 4 << 20   # 32 MiB default scoped VMEM -> 16 MiB of pipeline buffers
    return 2 << 20       # v5e & older: 16 MiB default scoped VMEM -> 8 MiB buffers


def _linear_1to1_kernel(w_ref, b_ref, x_ref, o_ref):
    # w_ref, b_ref : (1, 1) f32 scalars in SMEM
    # x_ref, o_ref : (tile_rows, 128) VMEM slabs
    # Pure VPU fused multiply-add in f32; no MXU involvement.
    x = x_ref[...].astype(jnp.float32)
    o_ref[...] = (x * w_ref[0, 0] + b_ref[0, 0]).astype(o_ref.dtype)


def linear_forward(x, weight, bias):
    """x: (B, in_features), weight: (out, in), bias: (out,) -> (B, out).

    Specialized for the module's in_features == out_features == 1 case.
    """
    B, IN = x.shape
    OUT = weight.shape[0]
    assert IN == 1 and OUT == 1, "kernel is specialized for nn.Linear(1, 1)"
    # TODO(synk): general (IN, OUT) Linear path (MXU dot + K-axis accumulator)
    # is not needed for this module; only the 1->1 case is exercised.

    dtype = x.dtype
    itemsize = jnp.dtype(dtype).itemsize
    sublanes = _sublanes_for(dtype)

    flat = x.reshape(-1)                      # (B,) — free contiguous reshape
    n = flat.shape[0]

    # Pad only to one (sublanes x 128)-element granule; skip when aligned.
    granule = sublanes * _LANES
    padded_n = pl.cdiv(n, granule) * granule
    padded = padded_n != n
    if padded:
        flat = jnp.pad(flat, (0, padded_n - n))
    rows = padded_n // _LANES
    x_slab = flat.reshape(rows, _LANES)       # free contiguous reshape

    # ~2-4 MiB lane-dense tiles (multiple of the dtype's sublane granularity).
    max_tile_rows = max(sublanes, _tile_bytes_budget() // (_LANES * itemsize))
    max_tile_rows = (max_tile_rows // sublanes) * sublanes
    tile_rows = min(max_tile_rows, rows)

    grid = (pl.cdiv(rows, tile_rows),)        # ragged last block handled by Pallas

    # Scalars for SMEM, kept in f32 so math matches the f32 PyTorch Linear.
    w2 = weight.reshape(1, 1).astype(jnp.float32)
    b2 = bias.reshape(1, 1).astype(jnp.float32)

    out_slab = pl.pallas_call(
        _linear_1to1_kernel,
        out_shape=jax.ShapeDtypeStruct((rows, _LANES), dtype),
        grid_spec=pltpu.PrefetchScalarGridSpec(
            num_scalar_prefetch=0,
            grid=grid,
            in_specs=[
                pl.BlockSpec(memory_space=pltpu.MemorySpace.SMEM),    # weight scalar
                pl.BlockSpec(memory_space=pltpu.MemorySpace.SMEM),    # bias scalar
                pl.BlockSpec((tile_rows, _LANES), lambda i: (i, 0)),  # x tile
            ],
            out_specs=pl.BlockSpec((tile_rows, _LANES), lambda i: (i, 0)),
        ),
        compiler_params=pltpu.CompilerParams(
            dimension_semantics=("parallel",),           # v7x: shard over 2 TCs
            allow_input_fusion=[False, False, True],     # fuse pad/reshape into x DMA
        ),
    )(w2, b2, x_slab)

    # Restore the (B, OUT) nn.Linear output layout (slice only if we padded).
    if padded:
        return out_slab.reshape(-1)[:n].reshape(B, OUT)
    return out_slab.reshape(B, OUT)


if __name__ == "__main__":
    key = jax.random.PRNGKey(0)

    # Module parameters (deterministic, per __init__): Linear(1, 1),
    # weight filled with 2.0, bias filled with 1.0.
    in_features, out_features = 1, 1
    weight = jnp.full((out_features, in_features), 2.0, dtype=jnp.float32)
    bias = jnp.full((out_features,), 1.0, dtype=jnp.float32)

    # Small example input consistent with nn.Linear(1, 1): (batch, 1).
    # batch=8 exercises the padded (unaligned) path.
    batch = 8
    x = jax.random.normal(key, (batch, in_features), dtype=jnp.float32)
    y = jax.block_until_ready(linear_forward(x, weight, bias))
    y_ref = x @ weight.T + bias
    assert y.shape == (batch, out_features)
    assert jnp.allclose(y, y_ref, atol=1e-6), (y, y_ref)

    # A 128*8-aligned batch exercises the zero-copy (no pad / no slice) path.
    batch2 = 2048
    x2 = jax.random.normal(jax.random.PRNGKey(1), (batch2, in_features), jnp.float32)
    y2 = jax.block_until_ready(linear_forward(x2, weight, bias))
    y2_ref = x2 @ weight.T + bias
    assert y2.shape == (batch2, out_features)
    assert jnp.allclose(y2, y2_ref, atol=1e-6)

    print("KERNEL_OK")
</pallas_src>

<mosaic_0001>
module attributes {stable_mosaic.version = 11 : i64} {
  func.func @_linear_1to1_kernel(%arg0: i32, %arg1: memref<1x1xf32, #tpu.memory_space<smem>>, %arg2: memref<1x1xf32, #tpu.memory_space<smem>>, %arg3: memref<8x128xf32, #tpu.memory_space<vmem>>, %arg4: memref<8x128xf32, #tpu.memory_space<vmem>>) attributes {dimension_semantics = [#tpu.dimension_semantics<parallel>], iteration_bounds = array<i64: 1>, scalar_prefetch = 0 : i64, scratch_operands = 0 : i64, tpu.core_type = #tpu.core_type<tc>, window_params = [{transform_indices = @transform_0, window_bounds = array<i64: 1, 1>}, {transform_indices = @transform_1, window_bounds = array<i64: 1, 1>}, {transform_indices = @transform_2, window_bounds = array<i64: 8, 128>}, {transform_indices = @transform_3, window_bounds = array<i64: 8, 128>}]} {
    %c0 = arith.constant 0 : index
    %c0_0 = arith.constant 0 : index
    %0 = vector.load %arg3[%c0, %c0_0] : memref<8x128xf32, #tpu.memory_space<vmem>>, vector<8x128xf32>
    %c0_1 = arith.constant 0 : index
    %c0_2 = arith.constant 0 : index
    %1 = memref.load %arg1[%c0_1, %c0_2] : memref<1x1xf32, #tpu.memory_space<smem>>
    %2 = vector.broadcast %1 : f32 to vector<8x128xf32>
    %3 = arith.mulf %0, %2 : vector<8x128xf32>
    %c0_3 = arith.constant 0 : index
    %c0_4 = arith.constant 0 : index
    %4 = memref.load %arg2[%c0_3, %c0_4] : memref<1x1xf32, #tpu.memory_space<smem>>
    %5 = vector.broadcast %4 : f32 to vector<8x128xf32>
    %6 = arith.addf %3, %5 : vector<8x128xf32>
    %c0_5 = arith.constant 0 : index
    %c0_6 = arith.constant 0 : index
    %7 = vector.load %arg4[%c0_5, %c0_6] : memref<8x128xf32, #tpu.memory_space<vmem>>, vector<8x128xf32>
    tpu.vector_store %arg4[%c0_5, %c0_6], %6 {strides = array<i32>} : memref<8x128xf32, #tpu.memory_space<vmem>>, vector<8x128xf32>,
    return
  }
  func.func @transform_0(%arg0: i32) -> (i32, i32) {
    %c0_i32 = arith.constant 0 : i32
    %c0_i32_0 = arith.constant 0 : i32
    %c0_i32_1 = arith.constant 0 : i32
    return %c0_i32, %c0_i32_0 : i32, i32
  }
  func.func @transform_1(%arg0: i32) -> (i32, i32) {
    %c0_i32 = arith.constant 0 : i32
    %c0_i32_0 = arith.constant 0 : i32
    %c0_i32_1 = arith.constant 0 : i32
    return %c0_i32, %c0_i32_0 : i32, i32
  }
  func.func @transform_2(%arg0: i32) -> (i32, i32) {
    %c0_i32 = arith.constant 0 : i32
    %c0_i32_0 = arith.constant 0 : i32
    return %arg0, %c0_i32 : i32, i32
  }
  func.func @transform_3(%arg0: i32) -> (i32, i32) {
    %c0_i32 = arith.constant 0 : i32
    %c0_i32_0 = arith.constant 0 : i32
    return %arg0, %c0_i32 : i32, i32
  }
}

</mosaic_0001>

<bundles_post_ra>
// kernel: tpu_custom_call.1
= control target key start
LH: loop header
LB: loop body
LE: loop exit
PB: predicated region body
PF: predicated region fallthrough
CT: control target
= control target key end

     0   :  { %10 = vsyncpa [#allocation5], 0  ;;  %s132_s0 = inlined_call_operand.<no memory space> [shape: f32[1,1], index: 0, kind: input, shape index: {}]   ;;  %s133_s1 = inlined_call_operand.<no memory space> [shape: f32[1,1], index: 1, kind: input, shape index: {}]   ;;  %s134_s2 = inlined_call_operand.hbm [shape: f32[8,128], index: 2, kind: input, shape index: {}]   ;;  %s135_s3 = inlined_call_operand.hbm [shape: f32[8,128], index: 3, kind: output, shape index: {}]  }
   0x1   :  { %11 = vsyncpa [#allocation6], 0  ;;  %s98_s12 = smov [#allocation4]  }
   0x2   :  { %s22_s13 = sshll.u32 %s98_s12, 4  ;;  %s23_s13 = int_to_ptr.vmem [resolvable:$true] %s22_s13 }
   0x3   :  { %s62_s14 = scalar_lea.vmem %s23_s13, 128  ;;  %p67_p1 = scmp.lt.s32.totalorder %s23_s13, %s23_s13 }
   0x4   :  { %p63_p0 = scmp.ne.s32.totalorder %s23_s13, %s62_s14  ;;  %p68_p2 = scmp.lt.s32.totalorder %s62_s14, %s62_s14 }
   0x6   :  { %p69_p3 = por %p68_p2, %p67_p1 }
   0x8   :  { %p70_p4 = pnand %p69_p3, %p63_p0 }
   0xa   :  { %73 = shalt.err (!%p70_p4)
}
   0xb   :  { %25 = dma.hbm_to_vmem [thread:$0]  %s134_s2, 128, %s23_s13, [#allocation5]  }
   0xc   :  { %94 = dma.done.wait [#allocation5], 128  }
   0xd   :  { %95 = vsyncadd [#allocation5], 4294967168  ;;  %v31_v0 = vstv %s132_s0  ;;  %v29_v1 = vld [vmem:[#allocation4] sm:$0xff]  ;;  %v34_v2 = vstv %s133_s1  ;;  %s99_s21 = smov [#allocation7]  }
   0xe   :  { %s43_s22 = sshll.u32 %s99_s21, 4  ;;  %v32_v3 = vmul.f32 %v31_v0, %v29_v1  ;;  %s44_s22 = int_to_ptr.vmem [resolvable:$true] %s43_s22 }
   0xf   :  { %s74_s23 = scalar_lea.vmem %s44_s22, 128  ;;  %p79_p6 = scmp.lt.s32.totalorder %s44_s22, %s44_s22 }
  0x10   :  { %v35_v4 = vadd.f32 %v34_v2, %v32_v3  ;;  %p75_p5 = scmp.ne.s32.totalorder %s44_s22, %s74_s23  ;;  %p80_p7 = scmp.lt.s32.totalorder %s74_s23, %s74_s23 }
  0x12   :  { %36 = vst [vmem:[#allocation7] sm:$0xff] %v35_v4  ;;  %p81_p8 = por %p80_p7, %p79_p6 }
  0x14   :  { %p82_p9 = pnand %p81_p8, %p75_p5 }
  0x16   :  { %85 = shalt.err (!%p82_p9)
}
  0x17   :  { %46 = dma.vmem_to_hbm [thread:$0]  %s44_s22, 128, %s135_s3, [#allocation6]  }
  0x18   :  { %96 = dma.done.wait [#allocation6], 128  }
  0x19   :  { %97 = vsyncadd [#allocation6], 4294967168 }
  0x1a   :  { %50 = vsyncpa [#allocation5], 1 }
  0x1b   :  { %51 = vsyncpa [#allocation6], 1 }

</bundles_post_ra>
